<compile_context>
chip_gen: v7x
topology: tpu7x:2x2x1
jax: 0.10.0
libtpu: 0.0.40
codegen_flags: <defaults>
</compile_context>

<pallas_src>
import jax
import jax.numpy as jnp
from jax.experimental import pallas as pl
from jax.experimental.pallas import tpu as pltpu


def linear_add_relu_kernel(x_ref, w_ref, b_ref, other_ref, o_ref):
    # One small MXU matmul, then bias + `other` add and ReLU on the VPU.
    y = jnp.dot(x_ref[...], w_ref[...], preferred_element_type=jnp.float32)
    y = y + b_ref[...] + other_ref[...]
    o_ref[...] = jnp.maximum(y, 0.0)


def linear_add_relu(x, w, b, other):
    """x: (batch, in_f); w: (in_f, out_f); b, other: (1, out_f). All f32."""
    batch, in_f = x.shape
    out_f = w.shape[1]

    flops = 2 * batch * in_f * out_f
    bytes_accessed = 4 * (x.size + w.size + b.size + other.size + batch * out_f)

    vmem = pltpu.MemorySpace.VMEM
    return pl.pallas_call(
        linear_add_relu_kernel,
        out_shape=jax.ShapeDtypeStruct((batch, out_f), x.dtype),
        # Full-array blocks (block shapes equal the array dims); single grid
        # point, so every index_map is trivially (0, 0).
        in_specs=[
            pl.BlockSpec((batch, in_f), lambda: (0, 0), memory_space=vmem),
            pl.BlockSpec((in_f, out_f), lambda: (0, 0), memory_space=vmem),
            pl.BlockSpec((1, out_f), lambda: (0, 0), memory_space=vmem),
            pl.BlockSpec((1, out_f), lambda: (0, 0), memory_space=vmem),
        ],
        out_specs=pl.BlockSpec((batch, out_f), lambda: (0, 0), memory_space=vmem),
        cost_estimate=pl.CostEstimate(
            flops=flops, transcendentals=0, bytes_accessed=bytes_accessed
        ),
    )(x, w, b, other)


def reference(x, w, b, other):
    return jnp.maximum(x @ w + b + other, 0.0)


if __name__ == "__main__":
    key = jax.random.PRNGKey(0)
    k_x, k_w, k_b, k_o = jax.random.split(key, 4)

    batch, in_f, out_f = 4, 32, 8

    # Input, matching x1 = torch.randn(4, 32)
    x = jax.random.normal(k_x, (batch, in_f), dtype=jnp.float32)

    # Deterministic Linear(32, 8) parameters (PyTorch-style uniform init range).
    bound = 1.0 / jnp.sqrt(jnp.float32(in_f))
    w = jax.random.uniform(k_w, (in_f, out_f), jnp.float32, -bound, bound)
    b = jax.random.uniform(k_b, (1, out_f), jnp.float32, -bound, bound)

    # Deterministic stand-in for the undefined global `other`.
    other = jax.random.normal(k_o, (1, out_f), dtype=jnp.float32)

    out = linear_add_relu(x, w, b, other)
    out = jax.block_until_ready(out)

    ref = reference(x, w, b, other)
    assert out.shape == (batch, out_f)
    assert jnp.allclose(out, ref, atol=1e-5, rtol=1e-5)

    print("KERNEL_OK")
</pallas_src>

<mosaic_0001>
module attributes {stable_mosaic.version = 11 : i64} {
  func.func @linear_add_relu_kernel(%arg0: memref<4x32xf32, #tpu.memory_space<vmem>>, %arg1: memref<32x8xf32, #tpu.memory_space<vmem>>, %arg2: memref<1x8xf32, #tpu.memory_space<vmem>>, %arg3: memref<1x8xf32, #tpu.memory_space<vmem>>, %arg4: memref<4x8xf32, #tpu.memory_space<vmem>>) attributes {dimension_semantics = [], scalar_prefetch = 0 : i64, scratch_operands = 0 : i64, tpu.core_type = #tpu.core_type<tc>} {
    %c0 = arith.constant 0 : index
    %c0_0 = arith.constant 0 : index
    %0 = vector.load %arg0[%c0, %c0_0] : memref<4x32xf32, #tpu.memory_space<vmem>>, vector<4x32xf32>
    %c0_1 = arith.constant 0 : index
    %c0_2 = arith.constant 0 : index
    %1 = vector.load %arg1[%c0_1, %c0_2] : memref<32x8xf32, #tpu.memory_space<vmem>>, vector<32x8xf32>
    %cst = arith.constant dense<0.000000e+00> : vector<4x8xf32>
    %2 = tpu.matmul %0, %1, %cst {dimension_numbers = #tpu.dot_dimension_numbers<[1], [0], [0], [1], [0, 0, 1, 1], [], []>} : vector<4x32xf32>, vector<32x8xf32>, vector<4x8xf32> -> vector<4x8xf32>
    %c0_3 = arith.constant 0 : index
    %c0_4 = arith.constant 0 : index
    %3 = vector.load %arg2[%c0_3, %c0_4] : memref<1x8xf32, #tpu.memory_space<vmem>>, vector<1x8xf32>
    %4 = vector.broadcast %3 : vector<1x8xf32> to vector<4x8xf32>
    %5 = arith.addf %2, %4 : vector<4x8xf32>
    %c0_5 = arith.constant 0 : index
    %c0_6 = arith.constant 0 : index
    %6 = vector.load %arg3[%c0_5, %c0_6] : memref<1x8xf32, #tpu.memory_space<vmem>>, vector<1x8xf32>
    %7 = vector.broadcast %6 : vector<1x8xf32> to vector<4x8xf32>
    %8 = arith.addf %5, %7 : vector<4x8xf32>
    %cst_7 = arith.constant 0.000000e+00 : f32
    %9 = vector.broadcast %cst_7 : f32 to vector<4x8xf32>
    %10 = arith.maximumf %8, %9 : vector<4x8xf32>
    %c0_8 = arith.constant 0 : index
    %c0_9 = arith.constant 0 : index
    %11 = vector.load %arg4[%c0_8, %c0_9] : memref<4x8xf32, #tpu.memory_space<vmem>>, vector<4x8xf32>
    tpu.vector_store %arg4[%c0_8, %c0_9], %10 {strides = array<i32>} : memref<4x8xf32, #tpu.memory_space<vmem>>, vector<4x8xf32>,
    return
  }
}

</mosaic_0001>

<bundles_post_ra>
// kernel: tpu_custom_call.1
= control target key start
LH: loop header
LB: loop body
LE: loop exit
PB: predicated region body
PF: predicated region fallthrough
CT: control target
= control target key end

     0   :  { %v182_v3 = vmov 0.0|0.0   ;;  %vm183_vm0 = vmmov 0   ;;  %v184_v6 = vmov 0.0   ;;  %s244_s0 = inlined_call_operand.vmem [shape: f32[4,32], index: 0, kind: input, shape index: {}]   ;;  %s245_s1 = inlined_call_operand.vmem [shape: f32[32,8], index: 1, kind: input, shape index: {}]   ;;  %s246_s2 = inlined_call_operand.vmem [shape: f32[1,8], index: 2, kind: input, shape index: {}]   ;;  %s247_s3 = inlined_call_operand.vmem [shape: f32[1,8], index: 3, kind: input, shape index: {}]   ;;  %s248_s4 = inlined_call_operand.hbm [shape: f32[4,8], index: 4, kind: output, shape index: {}]  }
   0x1   :  { %v19_v0 = vld [vmem:[%s245_s1] sm:$0xff]  ;;  %v20_v1 = vld [vmem:[%s245_s1 + $0x8] sm:$0xff]  ;;  %v21_v2 = vld [vmem:[%s245_s1 + $0x10] sm:$0xff]  ;;  %148 = vmatprep.subr.bf16.mxu0 %v182_v3  ;;  %145 = vmatprep.mubr.msk.f32.mxu0 %vm183_vm0, %v184_v6 }
   0x2   :  { %v149_v4 = vpack.c.bf16 %v20_v1, %v19_v0  ;;  %v22_v5 = vld [vmem:[%s245_s1 + $0x18] sm:$0xff] }
   0x3   :  { %9 = vsyncpa [#allocation3], 0  ;;  %v152_v7 = vpack.c.bf16 %v22_v5, %v21_v2  ;;  %v18_v8 = vld [vmem:[%s244_s0] sm:$0xf]  ;;  %vm30_vm1 = vcmask 261120   ;;  %s185_s28 = smov [#allocation2]  }
   0x4   :  { %150 = vmatpush3.bf16.msra.mxu0 %v149_v4  ;;  %v129_v9 = vld [vmem:[%s246_s2] ss:$0 sm:$0xff]  ;;  %s121_s29 = sshll.u32 %s185_s28, 4  ;;  %vm113_vm2 = vcmask 60416   ;;  %s122_s29 = int_to_ptr.vmem [resolvable:$true] %s121_s29 }
   0x5   :  { %151 = vmatprep.subr.bf16.mxu0 %v182_v3  ;;  %v131_v11 = vld [vmem:[%s247_s3] ss:$0 sm:$0xff]  ;;  %s158_s0 = scalar_lea.vmem %s122_s29, 64  ;;  %p163_p1 = scmp.lt.s32.totalorder %s122_s29, %s122_s29 }
   0x6   :  { %p159_p0 = scmp.ne.s32.totalorder %s122_s29, %s158_s0  ;;  %p164_p2 = scmp.lt.s32.totalorder %s158_s0, %s158_s0 }
   0x8   :  { %153 = vmatpush3.bf16.msra.mxu0 %v152_v7  ;;  %p165_p3 = por %p164_p2, %p163_p1 }
   0xa   :  { %p166_p4 = pnand %p165_p3, %p159_p0 }
   0xb   :  { %146 = vmatmul.mubr.msk.f32.vlgmr.msra.gmra.mrb[0].mxu0 %vm30_vm1, %v18_v8 }
  0xde   :  { %v100_v10 = vpop.f32.mrb[0].mxu0 }
  0xdf   :  { %v101_v12 = vadd.f32 %v129_v9, %v100_v10  ;;  %v147_v13 = vpop.f32.mrb[1].mxu0 }
  0xe1   :  { %v111_v14 = vadd.f32 %v131_v11, %v101_v12 }
  0xe3   :  { %v112_v15 = vmax.f32 %v111_v14, 0.0 }
  0xe5   :  { %114 = vst.msk [vmem:[#allocation2] sm:$0xf] %vm113_vm2, %v112_v15 }
  0xe6   :  { %169 = shalt.err (!%p166_p4)
}
  0xe7   :  { %s170_s3 = scalar_lea.hbm %s248_s4, 64 }
  0xe8   :  { %p171_p5 = scmp.ne.s32.totalorder %s248_s4, %s170_s3  ;;  %p174_p6 = scmp.lt.u32.totalorder %s170_s3, %s248_s4 }
  0xea   :  { %p176_p7 = pnand %p174_p6, %p171_p5 }
  0xec   :  { %179 = shalt.err (!%p176_p7)
}
  0xed   :  { %124 = dma.vmem_to_hbm [thread:$0]  %s122_s29, 64, %s248_s4, [#allocation3]  }
  0xee   :  { %180 = dma.done.wait [#allocation3], 64  }
  0xef   :  { %181 = vsyncadd [#allocation3], 4294967232 }
  0xf0   :  { %128 = vsyncpa [#allocation3], 1 }

</bundles_post_ra>
